<compile_context>
chip_gen: v7x
topology: tpu7x:2x2x1
jax: 0.10.0
libtpu: 0.0.40
codegen_flags: <defaults>
</compile_context>

<pallas_src>
import functools
import math

import jax
import jax.numpy as jnp
from jax.experimental import pallas as pl
from jax.experimental.pallas import tpu as pltpu


def _round_up(v, m):
    return -(-v // m) * m


def _adapter_kernel(x_ref, wd_ref, bd_ref, ws_ref, bs_ref, wu_ref, bu_ref, o_ref):
    """down(Linear+ReLU) -> shared(Linear+ReLU) -> up(Linear) -> residual add.

    The adapter scale is pre-folded into wu/bu; matmul operands arrive in the
    MXU dtype chosen by the wrapper (bf16 by default); accumulation and the
    residual add stay in f32.  Rows are independent, so garbage in the
    out-of-bounds sublanes of a partial last tile never contaminates valid
    rows and is masked on store.
    """
    x = x_ref[...]                                                   # (tr, Dp)
    xm = x.astype(wd_ref.dtype)
    h = jnp.dot(xm, wd_ref[...], preferred_element_type=jnp.float32) + bd_ref[...]
    h = jnp.maximum(h, 0.0)
    h = jnp.dot(h.astype(ws_ref.dtype), ws_ref[...],
                preferred_element_type=jnp.float32) + bs_ref[...]
    h = jnp.maximum(h, 0.0)
    u = jnp.dot(h.astype(wu_ref.dtype), wu_ref[...],
                preferred_element_type=jnp.float32) + bu_ref[...]
    o_ref[...] = (x.astype(jnp.float32) + u).astype(o_ref.dtype)


def _choose_tile_r(n_rows, target=1024):
    """Large row tiles amortize the ~0.35us/step pipeline overhead.  target=1024
    fits the v5e 16 MiB scoped-VMEM default at D<=768 f32 and is well inside
    v6e/v7x's 32 MiB.  When more than one step is needed, round the step count
    up to an even number so dimension_semantics=('parallel',) splits the row
    axis evenly across v7x's two TensorCores."""
    n_rows = max(int(n_rows), 1)
    grid = pl.cdiv(n_rows, target)
    if grid > 1 and grid % 2 == 1:
        grid += 1
    return max(8, _round_up(pl.cdiv(n_rows, grid), 8))


@functools.partial(
    jax.jit, static_argnames=("tile_r", "mid_valid", "single_buffer_weights"))
def _fused_adapter_call(x, wd, bd, ws, bs, wu, bu, *,
                        tile_r, mid_valid, single_buffer_weights):
    orig_shape = x.shape
    d_valid = orig_shape[-1]
    x2 = x.reshape(-1, d_valid)                  # layout-preserving, no copy
    R = x2.shape[0]
    D_p, mid_p = wd.shape

    if d_valid != D_p:
        # Test-only fallback (D % 128 != 0): lane-pad so the matmul axis never
        # needs masking.  Real CLIP widths (512/768/1024) never take this path.
        x2 = jnp.pad(x2, ((0, 0), (0, D_p - d_valid)))

    grid_r = pl.cdiv(R, tile_r)

    # Grid-invariant weights/biases: single-buffer them (they are re-used every
    # step); frees ~0.5 MiB of VMEM headroom for the x/out double buffers.
    w_kwargs = dict(pipeline_mode=pl.Buffered(1)) if single_buffer_weights else {}

    def const_spec(shape):
        return pl.BlockSpec(shape, lambda i: (0, 0), **w_kwargs)

    # Cost hint with UNPADDED dims (scheduler hint, not inflated by padding).
    flops = 2 * R * (d_valid * mid_valid + mid_valid * mid_valid + mid_valid * d_valid)
    bytes_accessed = (
        2 * R * d_valid * x2.dtype.itemsize
        + (wd.size + ws.size + wu.size) * wd.dtype.itemsize
        + (bd.size + bs.size + bu.size) * 4)

    out = pl.pallas_call(
        _adapter_kernel,
        out_shape=jax.ShapeDtypeStruct((R, D_p), x2.dtype),
        grid_spec=pltpu.PrefetchScalarGridSpec(
            num_scalar_prefetch=0,
            grid=(grid_r,),
            in_specs=[
                pl.BlockSpec((tile_r, D_p), lambda i: (i, 0)),   # x row tile
                const_spec((D_p, mid_p)),                        # w_down
                const_spec((1, mid_p)),                          # b_down
                const_spec((mid_p, mid_p)),                      # w_shared
                const_spec((1, mid_p)),                          # b_shared
                const_spec((mid_p, D_p)),                        # w_up (scale folded)
                const_spec((1, D_p)),                            # b_up (scale folded)
            ],
            out_specs=pl.BlockSpec((tile_r, D_p), lambda i: (i, 0)),
        ),
        compiler_params=pltpu.CompilerParams(
            dimension_semantics=("parallel",),
            vmem_limit_bytes=32 * 1024 * 1024),
        cost_estimate=pl.CostEstimate(
            flops=flops, transcendentals=0, bytes_accessed=bytes_accessed),
    )(x2, wd, bd, ws, bs, wu, bu)

    if d_valid != D_p:
        out = out[:, :d_valid]
    return out.reshape(orig_shape)


def _prepare_adapter_weights(adapter, shared, scale, matmul_dtype):
    """One-time per-layer prep: pad to lane-dense 128 tiles, fold the adapter
    scale into the up-projection, cast matmul operands.  Memoized inside the
    adapter dict so repeated applications (12 layers x every step) pay zero
    host-side prep and never re-stream the weights through extra XLA ops."""
    key = (float(scale), jnp.dtype(matmul_dtype).name, id(shared["w"]))
    cache = adapter.setdefault("_prepared_cache", {})
    hit = cache.get(key)
    if hit is not None:
        return hit

    D, mid = adapter["w_down"].shape
    # mid stays at one 128-lane tile: do NOT pad to 256 to "fill" the v6e/v7x
    # MXU -- the kernel is HBM-bound and extra K-depth is zero-work.
    # Zero padding is numerically exact (bias 0 through ReLU, zero wu columns).
    mid_p = _round_up(mid, 128)
    D_p = _round_up(D, 128)

    f32 = jnp.float32
    wd = jnp.zeros((D_p, mid_p), f32).at[:D, :mid].set(adapter["w_down"].astype(f32))
    bd = jnp.zeros((1, mid_p), f32).at[0, :mid].set(adapter["b_down"].astype(f32))
    ws = jnp.zeros((mid_p, mid_p), f32).at[:mid, :mid].set(shared["w"].astype(f32))
    bs = jnp.zeros((1, mid_p), f32).at[0, :mid].set(shared["b"].astype(f32))
    wu = jnp.zeros((mid_p, D_p), f32).at[:mid, :D].set(
        adapter["w_up"].astype(f32) * float(scale))
    bu = jnp.zeros((1, D_p), f32).at[0, :D].set(
        adapter["b_up"].astype(f32) * float(scale))

    prepared = (wd.astype(matmul_dtype), bd, ws.astype(matmul_dtype), bs,
                wu.astype(matmul_dtype), bu, int(mid))
    cache[key] = prepared
    return prepared


# Flipped off once (and retried without Buffered(1)) if this jax build rejects
# single-buffered BlockSpecs; keeps the script running everywhere.
_SINGLE_BUFFER_WEIGHTS = True


def apply_adapter_pallas(x, adapter, shared, scale, *,
                         matmul_dtype=jnp.bfloat16, tile_r=None):
    """Apply down -> shared -> up adapter with residual, fused in one Pallas kernel.

    x: (..., D) array (f32 or bf16 -- output matches x's dtype).
    adapter: dict with w_down (D,mid), b_down (mid,), w_up (mid,D), b_up (D,).
    shared: dict with w (mid,mid), b (mid,).
    """
    global _SINGLE_BUFFER_WEIGHTS

    D = int(x.shape[-1])
    R = int(math.prod(x.shape[:-1])) if x.ndim > 1 else 1

    wd, bd, ws, bs, wu, bu, mid = _prepare_adapter_weights(
        adapter, shared, scale, matmul_dtype)

    if tile_r is None:
        tile_r = _choose_tile_r(R)
    # Clamp to the full row extent: a block equal to the full array dim is
    # always legal, and small inputs then run as a single full-extent block
    # with no host-side row padding.
    tile_r = int(min(int(tile_r), max(R, 1)))

    kwargs = dict(tile_r=tile_r, mid_valid=mid)
    out = None
    if _SINGLE_BUFFER_WEIGHTS:
        try:
            out = _fused_adapter_call(x, wd, bd, ws, bs, wu, bu,
                                      single_buffer_weights=True, **kwargs)
        except Exception:
            _SINGLE_BUFFER_WEIGHTS = False   # pl.Buffered(1) unsupported here
    if out is None:
        out = _fused_adapter_call(x, wd, bd, ws, bs, wu, bu,
                                  single_buffer_weights=False, **kwargs)
    return out


def _kaiming_linear(key, d_in, d_out, dtype=jnp.float32):
    # PyTorch: kaiming_normal_(weight (out,in), mode='fan_out', nonlinearity='relu')
    # => std = sqrt(2 / fan_out) = sqrt(2 / d_out); bias = 0.
    std = (2.0 / d_out) ** 0.5
    w = std * jax.random.normal(key, (d_in, d_out), dtype=jnp.float32)  # stored (in,out)
    b = jnp.zeros((d_out,), dtype=jnp.float32)
    return w.astype(dtype), b.astype(dtype)


class AdapterLearner:
    """JAX/Pallas reimplementation of the PyTorch AdapterLearner forward pass."""

    def __init__(self, key, *, n_cls, seq_len, d_text, d_visual, n_layers,
                 mid_dim=32, dtype=jnp.float32):
        self.n_cls = n_cls
        self.adapter_scale = 0.001
        self.dtype = dtype

        k_emb, k_txt, k_vis, k_shr = jax.random.split(key, 4)

        # TODO(synk): real module builds token_embedding from clip.tokenize +
        # clip_model.token_embedding; no CLIP checkpoint here, so use a
        # deterministic synthetic embedding buffer of the same shape.
        self.token_embedding = jax.random.normal(
            k_emb, (n_cls, seq_len, d_text), dtype=jnp.float32).astype(dtype)

        self.text_adapter = self._build_adapter(k_txt, d_text, n_layers, 1, 12, mid_dim)
        self.visual_adapter = self._build_adapter(k_vis, d_visual, n_layers, 1, 12, mid_dim)
        self.shared_adapter = self._build_adapter(k_shr, mid_dim, n_layers, 1, 12, mid_dim)

        self.text_adapter_func = lambda x: self.return_text_adapter(index=x)
        self.visual_adapter_func = lambda x: self.return_visual_adapter(index=x)

    def _build_adapter(self, key, d_model, n_layers, l_start, l_end, mid_dim):
        adapter = [None] * (n_layers + 1)
        keys = jax.random.split(key, (l_end - l_start + 1) * 2)
        for j, i in enumerate(range(l_start, l_end + 1)):
            if mid_dim == d_model:
                # nn.Sequential(nn.Linear(d_model, mid_dim), nn.ReLU())
                w, b = _kaiming_linear(keys[2 * j], d_model, mid_dim, self.dtype)
                adapter[i] = {"w": w, "b": b}
            else:
                # down: Linear(d_model, mid)+ReLU ; up: Linear(mid, d_model)
                wd, bd = _kaiming_linear(keys[2 * j], d_model, mid_dim, self.dtype)
                wu, bu = _kaiming_linear(keys[2 * j + 1], mid_dim, d_model, self.dtype)
                adapter[i] = {"w_down": wd, "b_down": bd, "w_up": wu, "b_up": bu}
        return adapter

    def return_text_adapter(self, index):
        return (self.text_adapter[index], self.shared_adapter[index], self.adapter_scale)

    def return_visual_adapter(self, index):
        return (self.visual_adapter[index], self.shared_adapter[index], self.adapter_scale)

    def forward(self):
        embedding = self.token_embedding
        if self.text_adapter[0] is not None:
            # Exact parity with the PyTorch branch (never taken, since l_start=1
            # leaves adapter[0] = None):  emb + scale * up(shared(down(emb)))
            embedding = apply_adapter_pallas(
                embedding, self.text_adapter[0], self.shared_adapter[0],
                self.adapter_scale)
        return embedding, self.text_adapter_func, self.visual_adapter_func


def _adapter_ref(x, adapter, shared, scale):
    """Pure-JAX f32 reference of the fused adapter kernel (for correctness check)."""
    xf = x.astype(jnp.float32)
    h = jnp.maximum(xf @ adapter["w_down"] + adapter["b_down"], 0.0)
    h = jnp.maximum(h @ shared["w"] + shared["b"], 0.0)
    u = h @ adapter["w_up"] + adapter["b_up"]
    return xf + scale * u


if __name__ == "__main__":
    key = jax.random.PRNGKey(0)

    # Small, module-consistent shapes: 2 classes, context length 8,
    # text/visual width 64, 12 transformer layers, adapter bottleneck 32.
    learner = AdapterLearner(key, n_cls=2, seq_len=8, d_text=64, d_visual=64,
                             n_layers=12, mid_dim=32, dtype=jnp.float32)

    # forward(): text_adapter[0] is None -> embedding is returned unchanged.
    embedding, text_adapter_func, visual_adapter_func = learner.forward()
    embedding = jax.block_until_ready(embedding)
    assert embedding.shape == (2, 8, 64)
    assert jnp.allclose(embedding, learner.token_embedding)

    # Exercise the Pallas adapter kernel the way the CLIP backbone would:
    # grab the layer-1 adapter via the returned function and apply it.
    adapter, shared, scale = text_adapter_func(1)
    out_ref = _adapter_ref(embedding, adapter, shared, scale)

    # Exact-path check (f32 MXU operands) -> tight tolerance (test knob only).
    out_f32 = jax.block_until_ready(
        apply_adapter_pallas(embedding, adapter, shared, scale,
                             matmul_dtype=jnp.float32))
    assert out_f32.shape == embedding.shape
    assert jnp.allclose(out_f32, out_ref, atol=1e-5, rtol=1e-5), \
        "Pallas (f32) vs JAX mismatch"

    # Default fast path (bf16 MXU operands, f32 accumulation + residual); the
    # 0.001 adapter scale attenuates bf16 matmul error.
    out_bf16 = jax.block_until_ready(
        apply_adapter_pallas(embedding, adapter, shared, scale))
    assert jnp.allclose(out_bf16, out_ref, atol=2e-3, rtol=2e-3), \
        "Pallas (bf16) vs JAX mismatch"

    # Second application of the same layer: weight prep + compilation are
    # cached (zero host-side prep on the steady-state path).
    out_bf16_again = jax.block_until_ready(
        apply_adapter_pallas(embedding, adapter, shared, scale))
    assert jnp.allclose(out_bf16_again, out_bf16)

    # Visual adapter path: odd row count (3*7=21 rows, not a multiple of 8)
    # exercises the no-row-padding path (full-extent block + masked store).
    v_adapter, v_shared, v_scale = visual_adapter_func(3)
    vis_tokens = jax.random.normal(jax.random.PRNGKey(1), (3, 7, 64), dtype=jnp.float32)
    vis_ref = _adapter_ref(vis_tokens, v_adapter, v_shared, v_scale)
    vis_f32 = jax.block_until_ready(
        apply_adapter_pallas(vis_tokens, v_adapter, v_shared, v_scale,
                             matmul_dtype=jnp.float32))
    assert jnp.allclose(vis_f32, vis_ref, atol=1e-5, rtol=1e-5)
    vis_bf16 = jax.block_until_ready(
        apply_adapter_pallas(vis_tokens, v_adapter, v_shared, v_scale))
    assert jnp.allclose(vis_bf16, vis_ref, atol=2e-3, rtol=2e-3)

    # bf16 activations (what a bf16 CLIP stack would pass): halves the HBM
    # traffic of the dominant x/out streams; residual add stays f32 in-kernel.
    emb_bf16 = embedding.astype(jnp.bfloat16)
    out_bf_act = jax.block_until_ready(
        apply_adapter_pallas(emb_bf16, adapter, shared, scale))
    assert out_bf_act.dtype == jnp.bfloat16
    assert jnp.allclose(out_bf_act.astype(jnp.float32), out_ref,
                        atol=2e-2, rtol=2e-2)

    print("KERNEL_OK")
</pallas_src>

<mosaic_0001>
module attributes {stable_mosaic.version = 11 : i64} {
  func.func @_adapter_kernel(%arg0: i32, %arg1: memref<16x128xf32, #tpu.memory_space<vmem>>, %arg2: memref<128x128xf32, #tpu.memory_space<vmem>>, %arg3: memref<1x128xf32, #tpu.memory_space<vmem>>, %arg4: memref<128x128xf32, #tpu.memory_space<vmem>>, %arg5: memref<1x128xf32, #tpu.memory_space<vmem>>, %arg6: memref<128x128xf32, #tpu.memory_space<vmem>>, %arg7: memref<1x128xf32, #tpu.memory_space<vmem>>, %arg8: memref<16x128xf32, #tpu.memory_space<vmem>>) attributes {dimension_semantics = [#tpu.dimension_semantics<parallel>], iteration_bounds = array<i64: 1>, scalar_prefetch = 0 : i64, scratch_operands = 0 : i64, tpu.core_type = #tpu.core_type<tc>, window_params = [{transform_indices = @transform_0, window_bounds = array<i64: 16, 128>}, {pipeline_mode = #tpu.pipeline_mode<synchronous>, transform_indices = @transform_1, window_bounds = array<i64: 128, 128>}, {pipeline_mode = #tpu.pipeline_mode<synchronous>, transform_indices = @transform_2, window_bounds = array<i64: 1, 128>}, {pipeline_mode = #tpu.pipeline_mode<synchronous>, transform_indices = @transform_3, window_bounds = array<i64: 128, 128>}, {pipeline_mode = #tpu.pipeline_mode<synchronous>, transform_indices = @transform_4, window_bounds = array<i64: 1, 128>}, {pipeline_mode = #tpu.pipeline_mode<synchronous>, transform_indices = @transform_5, window_bounds = array<i64: 128, 128>}, {pipeline_mode = #tpu.pipeline_mode<synchronous>, transform_indices = @transform_6, window_bounds = array<i64: 1, 128>}, {transform_indices = @transform_7, window_bounds = array<i64: 16, 128>}]} {
    %c0 = arith.constant 0 : index
    %c0_0 = arith.constant 0 : index
    %0 = vector.load %arg1[%c0, %c0_0] : memref<16x128xf32, #tpu.memory_space<vmem>>, vector<16x128xf32>
    %c0_1 = arith.constant 0 : index
    %c0_2 = arith.constant 0 : index
    %1 = vector.load %arg2[%c0_1, %c0_2] : memref<128x128xf32, #tpu.memory_space<vmem>>, vector<128x128xf32>
    %cst = arith.constant dense<0.000000e+00> : vector<16x128xf32>
    %2 = tpu.matmul %0, %1, %cst {dimension_numbers = #tpu.dot_dimension_numbers<[1], [0], [0], [1], [0, 0, 1, 1], [], []>} : vector<16x128xf32>, vector<128x128xf32>, vector<16x128xf32> -> vector<16x128xf32>
    %c0_3 = arith.constant 0 : index
    %c0_4 = arith.constant 0 : index
    %3 = vector.load %arg3[%c0_3, %c0_4] : memref<1x128xf32, #tpu.memory_space<vmem>>, vector<1x128xf32>
    %4 = vector.broadcast %3 : vector<1x128xf32> to vector<16x128xf32>
    %5 = arith.addf %2, %4 : vector<16x128xf32>
    %cst_5 = arith.constant 0.000000e+00 : f32
    %6 = vector.broadcast %cst_5 : f32 to vector<16x128xf32>
    %7 = arith.maximumf %5, %6 : vector<16x128xf32>
    %c0_6 = arith.constant 0 : index
    %c0_7 = arith.constant 0 : index
    %8 = vector.load %arg4[%c0_6, %c0_7] : memref<128x128xf32, #tpu.memory_space<vmem>>, vector<128x128xf32>
    %cst_8 = arith.constant dense<0.000000e+00> : vector<16x128xf32>
    %9 = tpu.matmul %7, %8, %cst_8 {dimension_numbers = #tpu.dot_dimension_numbers<[1], [0], [0], [1], [0, 0, 1, 1], [], []>} : vector<16x128xf32>, vector<128x128xf32>, vector<16x128xf32> -> vector<16x128xf32>
    %c0_9 = arith.constant 0 : index
    %c0_10 = arith.constant 0 : index
    %10 = vector.load %arg5[%c0_9, %c0_10] : memref<1x128xf32, #tpu.memory_space<vmem>>, vector<1x128xf32>
    %11 = vector.broadcast %10 : vector<1x128xf32> to vector<16x128xf32>
    %12 = arith.addf %9, %11 : vector<16x128xf32>
    %cst_11 = arith.constant 0.000000e+00 : f32
    %13 = vector.broadcast %cst_11 : f32 to vector<16x128xf32>
    %14 = arith.maximumf %12, %13 : vector<16x128xf32>
    %c0_12 = arith.constant 0 : index
    %c0_13 = arith.constant 0 : index
    %15 = vector.load %arg6[%c0_12, %c0_13] : memref<128x128xf32, #tpu.memory_space<vmem>>, vector<128x128xf32>
    %cst_14 = arith.constant dense<0.000000e+00> : vector<16x128xf32>
    %16 = tpu.matmul %14, %15, %cst_14 {dimension_numbers = #tpu.dot_dimension_numbers<[1], [0], [0], [1], [0, 0, 1, 1], [], []>} : vector<16x128xf32>, vector<128x128xf32>, vector<16x128xf32> -> vector<16x128xf32>
    %c0_15 = arith.constant 0 : index
    %c0_16 = arith.constant 0 : index
    %17 = vector.load %arg7[%c0_15, %c0_16] : memref<1x128xf32, #tpu.memory_space<vmem>>, vector<1x128xf32>
    %18 = vector.broadcast %17 : vector<1x128xf32> to vector<16x128xf32>
    %19 = arith.addf %16, %18 : vector<16x128xf32>
    %20 = arith.addf %0, %19 : vector<16x128xf32>
    %c0_17 = arith.constant 0 : index
    %c0_18 = arith.constant 0 : index
    %21 = vector.load %arg8[%c0_17, %c0_18] : memref<16x128xf32, #tpu.memory_space<vmem>>, vector<16x128xf32>
    tpu.vector_store %arg8[%c0_17, %c0_18], %20 {strides = array<i32>} : memref<16x128xf32, #tpu.memory_space<vmem>>, vector<16x128xf32>,
    return
  }
  func.func @transform_0(%arg0: i32) -> (i32, i32) {
    %c0_i32 = arith.constant 0 : i32
    %c0_i32_0 = arith.constant 0 : i32
    return %arg0, %c0_i32 : i32, i32
  }
  func.func @transform_1(%arg0: i32) -> (i32, i32) {
    %c0_i32 = arith.constant 0 : i32
    %c0_i32_0 = arith.constant 0 : i32
    %c0_i32_1 = arith.constant 0 : i32
    return %c0_i32, %c0_i32_0 : i32, i32
  }
  func.func @transform_2(%arg0: i32) -> (i32, i32) {
    %c0_i32 = arith.constant 0 : i32
    %c0_i32_0 = arith.constant 0 : i32
    %c0_i32_1 = arith.constant 0 : i32
    return %c0_i32, %c0_i32_0 : i32, i32
  }
  func.func @transform_3(%arg0: i32) -> (i32, i32) {
    %c0_i32 = arith.constant 0 : i32
    %c0_i32_0 = arith.constant 0 : i32
    %c0_i32_1 = arith.constant 0 : i32
    return %c0_i32, %c0_i32_0 : i32, i32
  }
  func.func @transform_4(%arg0: i32) -> (i32, i32) {
    %c0_i32 = arith.constant 0 : i32
    %c0_i32_0 = arith.constant 0 : i32
    %c0_i32_1 = arith.constant 0 : i32
    return %c0_i32, %c0_i32_0 : i32, i32
  }
  func.func @transform_5(%arg0: i32) -> (i32, i32) {
    %c0_i32 = arith.constant 0 : i32
    %c0_i32_0 = arith.constant 0 : i32
    %c0_i32_1 = arith.constant 0 : i32
    return %c0_i32, %c0_i32_0 : i32, i32
  }
  func.func @transform_6(%arg0: i32) -> (i32, i32) {
    %c0_i32 = arith.constant 0 : i32
    %c0_i32_0 = arith.constant 0 : i32
    %c0_i32_1 = arith.constant 0 : i32
    return %c0_i32, %c0_i32_0 : i32, i32
  }
  func.func @transform_7(%arg0: i32) -> (i32, i32) {
    %c0_i32 = arith.constant 0 : i32
    %c0_i32_0 = arith.constant 0 : i32
    return %arg0, %c0_i32 : i32, i32
  }
}

module attributes {stable_mosaic.version = 11 : i64} {
  func.func @_adapter_kernel(%arg0: i32, %arg1: memref<16x128xf32, #tpu.memory_space<vmem>>, %arg2: memref<128x128xf32, #tpu.memory_space<vmem>>, %arg3: memref<1x128xf32, #tpu.memory_space<vmem>>, %arg4: memref<128x128xf32, #tpu.memory_space<vmem>>, %arg5: memref<1x128xf32, #tpu.memory_space<vmem>>, %arg6: memref<128x128xf32, #tpu.memory_space<vmem>>, %arg7: memref<1x128xf32, #tpu.memory_space<vmem>>, %arg8: memref<16x128xf32, #tpu.memory_space<vmem>>) attributes {dimension_semantics = [#tpu.dimension_semantics<parallel>], iteration_bounds = array<i64: 1>, scalar_prefetch = 0 : i64, scratch_operands = 0 : i64, tpu.core_type = #tpu.core_type<tc>, window_params = [{transform_indices = @transform_0, window_bounds = array<i64: 16, 128>}, {pipeline_mode = #tpu.pipeline_mode<synchronous>, transform_indices = @transform_1, window_bounds = array<i64: 128, 128>}, {pipeline_mode = #tpu.pipeline_mode<synchronous>, transform_indices = @transform_2, window_bounds = array<i64: 1, 128>}, {pipeline_mode = #tpu.pipeline_mode<synchronous>, transform_indices = @transform_3, window_bounds = array<i64: 128, 128>}, {pipeline_mode = #tpu.pipeline_mode<synchronous>, transform_indices = @transform_4, window_bounds = array<i64: 1, 128>}, {pipeline_mode = #tpu.pipeline_mode<synchronous>, transform_indices = @transform_5, window_bounds = array<i64: 128, 128>}, {pipeline_mode = #tpu.pipeline_mode<synchronous>, transform_indices = @transform_6, window_bounds = array<i64: 1, 128>}, {transform_indices = @transform_7, window_bounds = array<i64: 16, 128>}]} {
    %c0 = arith.constant 0 : index
    %c0_0 = arith.constant 0 : index
    %0 = vector.load %arg1[%c0, %c0_0] : memref<16x128xf32, #tpu.memory_space<vmem>>, vector<16x128xf32>
    %c0_1 = arith.constant 0 : index
    %c0_2 = arith.constant 0 : index
    %1 = vector.load %arg2[%c0_1, %c0_2] : memref<128x128xf32, #tpu.memory_space<vmem>>, vector<128x128xf32>
    %cst = arith.constant dense<0.000000e+00> : vector<16x128xf32>
    %2 = tpu.matmul %0, %1, %cst {dimension_numbers = #tpu.dot_dimension_numbers<[1], [0], [0], [1], [0, 0, 1, 1], [], []>} : vector<16x128xf32>, vector<128x128xf32>, vector<16x128xf32> -> vector<16x128xf32>
    %c0_3 = arith.constant 0 : index
    %c0_4 = arith.constant 0 : index
    %3 = vector.load %arg3[%c0_3, %c0_4] : memref<1x128xf32, #tpu.memory_space<vmem>>, vector<1x128xf32>
    %4 = vector.broadcast %3 : vector<1x128xf32> to vector<16x128xf32>
    %5 = arith.addf %2, %4 : vector<16x128xf32>
    %cst_5 = arith.constant 0.000000e+00 : f32
    %6 = vector.broadcast %cst_5 : f32 to vector<16x128xf32>
    %7 = arith.maximumf %5, %6 : vector<16x128xf32>
    %c0_6 = arith.constant 0 : index
    %c0_7 = arith.constant 0 : index
    %8 = vector.load %arg4[%c0_6, %c0_7] : memref<128x128xf32, #tpu.memory_space<vmem>>, vector<128x128xf32>
    %cst_8 = arith.constant dense<0.000000e+00> : vector<16x128xf32>
    %9 = tpu.matmul %7, %8, %cst_8 {dimension_numbers = #tpu.dot_dimension_numbers<[1], [0], [0], [1], [0, 0, 1, 1], [], []>} : vector<16x128xf32>, vector<128x128xf32>, vector<16x128xf32> -> vector<16x128xf32>
    %c0_9 = arith.constant 0 : index
    %c0_10 = arith.constant 0 : index
    %10 = vector.load %arg5[%c0_9, %c0_10] : memref<1x128xf32, #tpu.memory_space<vmem>>, vector<1x128xf32>
    %11 = vector.broadcast %10 : vector<1x128xf32> to vector<16x128xf32>
    %12 = arith.addf %9, %11 : vector<16x128xf32>
    %cst_11 = arith.constant 0.000000e+00 : f32
    %13 = vector.broadcast %cst_11 : f32 to vector<16x128xf32>
    %14 = arith.maximumf %12, %13 : vector<16x128xf32>
    %c0_12 = arith.constant 0 : index
    %c0_13 = arith.constant 0 : index
    %15 = vector.load %arg6[%c0_12, %c0_13] : memref<128x128xf32, #tpu.memory_space<vmem>>, vector<128x128xf32>
    %cst_14 = arith.constant dense<0.000000e+00> : vector<16x128xf32>
    %16 = tpu.matmul %14, %15, %cst_14 {dimension_numbers = #tpu.dot_dimension_numbers<[1], [0], [0], [1], [0, 0, 1, 1], [], []>} : vector<16x128xf32>, vector<128x128xf32>, vector<16x128xf32> -> vector<16x128xf32>
    %c0_15 = arith.constant 0 : index
    %c0_16 = arith.constant 0 : index
    %17 = vector.load %arg7[%c0_15, %c0_16] : memref<1x128xf32, #tpu.memory_space<vmem>>, vector<1x128xf32>
    %18 = vector.broadcast %17 : vector<1x128xf32> to vector<16x128xf32>
    %19 = arith.addf %16, %18 : vector<16x128xf32>
    %20 = arith.addf %0, %19 : vector<16x128xf32>
    %c0_17 = arith.constant 0 : index
    %c0_18 = arith.constant 0 : index
    %21 = vector.load %arg8[%c0_17, %c0_18] : memref<16x128xf32, #tpu.memory_space<vmem>>, vector<16x128xf32>
    tpu.vector_store %arg8[%c0_17, %c0_18], %20 {strides = array<i32>} : memref<16x128xf32, #tpu.memory_space<vmem>>, vector<16x128xf32>,
    return
  }
  func.func @transform_0(%arg0: i32) -> (i32, i32) {
    %c0_i32 = arith.constant 0 : i32
    %c0_i32_0 = arith.constant 0 : i32
    return %arg0, %c0_i32 : i32, i32
  }
  func.func @transform_1(%arg0: i32) -> (i32, i32) {
    %c0_i32 = arith.constant 0 : i32
    %c0_i32_0 = arith.constant 0 : i32
    %c0_i32_1 = arith.constant 0 : i32
    return %c0_i32, %c0_i32_0 : i32, i32
  }
  func.func @transform_2(%arg0: i32) -> (i32, i32) {
    %c0_i32 = arith.constant 0 : i32
    %c0_i32_0 = arith.constant 0 : i32
    %c0_i32_1 = arith.constant 0 : i32
    return %c0_i32, %c0_i32_0 : i32, i32
  }
  func.func @transform_3(%arg0: i32) -> (i32, i32) {
    %c0_i32 = arith.constant 0 : i32
    %c0_i32_0 = arith.constant 0 : i32
    %c0_i32_1 = arith.constant 0 : i32
    return %c0_i32, %c0_i32_0 : i32, i32
  }
  func.func @transform_4(%arg0: i32) -> (i32, i32) {
    %c0_i32 = arith.constant 0 : i32
    %c0_i32_0 = arith.constant 0 : i32
    %c0_i32_1 = arith.constant 0 : i32
    return %c0_i32, %c0_i32_0 : i32, i32
  }
  func.func @transform_5(%arg0: i32) -> (i32, i32) {
    %c0_i32 = arith.constant 0 : i32
    %c0_i32_0 = arith.constant 0 : i32
    %c0_i32_1 = arith.constant 0 : i32
    return %c0_i32, %c0_i32_0 : i32, i32
  }
  func.func @transform_6(%arg0: i32) -> (i32, i32) {
    %c0_i32 = arith.constant 0 : i32
    %c0_i32_0 = arith.constant 0 : i32
    %c0_i32_1 = arith.constant 0 : i32
    return %c0_i32, %c0_i32_0 : i32, i32
  }
  func.func @transform_7(%arg0: i32) -> (i32, i32) {
    %c0_i32 = arith.constant 0 : i32
    %c0_i32_0 = arith.constant 0 : i32
    return %arg0, %c0_i32 : i32, i32
  }
}

</mosaic_0001>

<bundles_post_ra>
// kernel: _fused_adapter_call.1
= control target key start
LH: loop header
LB: loop body
LE: loop exit
PB: predicated region body
PF: predicated region fallthrough
CT: control target
= control target key end

     0   :  { %12 = vsyncpa [#allocation3], 0  ;;  %s836_s0 = inlined_call_operand.vmem [shape: f32[16,128], index: 0, kind: input, shape index: {}]   ;;  %s837_s1 = inlined_call_operand.hbm [shape: f32[128,128], index: 1, kind: input, shape index: {}]   ;;  %s838_s2 = inlined_call_operand.vmem [shape: f32[1,128], index: 2, kind: input, shape index: {}]   ;;  %s839_s3 = inlined_call_operand.hbm [shape: f32[128,128], index: 3, kind: input, shape index: {}]   ;;  %s840_s4 = inlined_call_operand.vmem [shape: f32[1,128], index: 4, kind: input, shape index: {}]   ;;  %s841_s5 = inlined_call_operand.hbm [shape: f32[128,128], index: 5, kind: input, shape index: {}]   ;;  %s842_s6 = inlined_call_operand.vmem [shape: f32[1,128], index: 6, kind: input, shape index: {}]   ;;  %s843_s7 = inlined_call_operand.vmem [shape: f32[16,128], index: 7, kind: output, shape index: {}]  }
   0x1   :  { %13 = vsyncpa [#allocation5], 0  ;;  %s710_s24 = smov [#allocation4]   ;;  %s711_s26 = smov [#allocation2]  }
   0x2   :  { %s35_s25 = sshll.u32 %s710_s24, 4  ;;  %s21_s27 = sshll.u32 %s711_s26, 4  ;;  %s36_s25 = int_to_ptr.vmem [resolvable:$true] %s35_s25  ;;  %s755_s27 = int_to_ptr.vmem [resolvable:$true] %s21_s27 }
   0x3   :  { %s640_s30 = scalar_lea.hbm %s839_s3, 2048 }
   0x4   :  { %p641_p0 = scmp.ne.s32.totalorder %s839_s3, %s640_s30  ;;  %p644_p1 = scmp.lt.u32.totalorder %s640_s30, %s839_s3 }
   0x6   :  { %p646_p2 = pnand %p644_p1, %p641_p0 }
   0x8   :  { %649 = shalt.err (!%p646_p2)
}
   0x9   :  { %s650_s12 = scalar_lea.vmem %s36_s25, 2048  ;;  %p655_p4 = scmp.lt.s32.totalorder %s36_s25, %s36_s25 }
   0xa   :  { %p651_p3 = scmp.ne.s32.totalorder %s36_s25, %s650_s12  ;;  %p656_p5 = scmp.lt.s32.totalorder %s650_s12, %s650_s12 }
   0xc   :  { %p657_p6 = por %p656_p5, %p655_p4 }
   0xe   :  { %p658_p7 = pnand %p657_p6, %p651_p3 }
  0x10   :  { %661 = shalt.err (!%p658_p7)
}
  0x11   :  { %s712_s13 = smov 128   ;;  %s713_s14 = smov 8  }
  0x12   :  { %41 = dma.hbm_to_vmem [thread:$0]  %s839_s3, 2048, %s36_s25, [#allocation5], %s712_s13, %s712_s13, %s713_s14  }
  0x13   :  { %s662_s19 = scalar_lea.hbm %s837_s1, 2048 }
  0x14   :  { %p663_p8 = scmp.ne.s32.totalorder %s837_s1, %s662_s19  ;;  %p666_p9 = scmp.lt.u32.totalorder %s662_s19, %s837_s1 }
  0x16   :  { %p668_p10 = pnand %p666_p9, %p663_p8 }
  0x18   :  { %671 = shalt.err (!%p668_p10)
}
  0x19   :  { %s672_s24 = scalar_lea.vmem %s755_s27, 2048  ;;  %p677_p12 = scmp.lt.s32.totalorder %s755_s27, %s755_s27 }
  0x1a   :  { %p673_p11 = scmp.ne.s32.totalorder %s755_s27, %s672_s24  ;;  %p678_p13 = scmp.lt.s32.totalorder %s672_s24, %s672_s24 }
  0x1c   :  { %p679_p0 = por %p678_p13, %p677_p12 }
  0x1e   :  { %p680_p1 = pnand %p679_p0, %p673_p11 }
  0x20   :  { %683 = shalt.err (!%p680_p1)
}
  0x21   :  { %27 = dma.hbm_to_vmem [thread:$0]  %s837_s1, 2048, %s755_s27, [#allocation3], %s712_s13, %s712_s13, %s713_s14  }
  0x22   :  { %s714_s26 = smov [#allocation6]   ;;  %s684_s8 = scalar_lea.hbm %s841_s5, 2048 }
  0x23   :  { %s49_s28 = sshll.u32 %s714_s26, 4  ;;  %p685_p2 = scmp.ne.s32.totalorder %s841_s5, %s684_s8  ;;  %s50_s28 = int_to_ptr.vmem [resolvable:$true] %s49_s28 }
  0x24   :  { %p688_p3 = scmp.lt.u32.totalorder %s684_s8, %s841_s5 }
  0x26   :  { %p690_p4 = pnand %p688_p3, %p685_p2 }
  0x28   :  { %693 = shalt.err (!%p690_p4)
}
  0x29   :  { %s694_s15 = scalar_lea.vmem %s50_s28, 2048  ;;  %p699_p6 = scmp.lt.s32.totalorder %s50_s28, %s50_s28 }
  0x2a   :  { %p695_p5 = scmp.ne.s32.totalorder %s50_s28, %s694_s15  ;;  %p700_p7 = scmp.lt.s32.totalorder %s694_s15, %s694_s15 }
  0x2c   :  { %p701_p8 = por %p700_p7, %p699_p6 }
  0x2e   :  { %p702_p9 = pnand %p701_p8, %p695_p5 }
  0x30   :  { %705 = shalt.err (!%p702_p9)
}
  0x31   :  { %55 = dma.hbm_to_vmem [thread:$0]  %s841_s5, 2048, %s50_s28, [#allocation5], %s712_s13, %s712_s13, %s713_s14  }
  0x32   :  { %706 = dma.done.wait [#allocation3], 2048  }
  0x33   :  { %707 = vsyncadd [#allocation3], 4294965248 }
  0x34   :  { %708 = dma.done.wait [#allocation5], 4096  }
  0x35   :  { %709 = vsyncadd [#allocation5], 4294963200  ;;  %v69_v0 = vld [vmem:[#allocation2] sm:$0xff]  ;;  %v70_v1 = vld [vmem:[#allocation2 + $0x8] sm:$0xff] }
  0x36   :  { %v71_v2 = vld [vmem:[#allocation2 + $0x10] sm:$0xff]  ;;  %v539_v3 = vpack.c.bf16 %v70_v1, %v69_v0  ;;  %v72_v4 = vld [vmem:[#allocation2 + $0x18] sm:$0xff]  ;;  %v73_v6 = vld [vmem:[#allocation2 + $0x20] sm:$0xff] }
  0x37   :  { %v543_v5 = vpack.c.bf16 %v72_v4, %v71_v2  ;;  %v74_v7 = vld [vmem:[#allocation2 + $0x28] sm:$0xff]  ;;  %v75_v9 = vld [vmem:[#allocation2 + $0x30] sm:$0xff]  ;;  %v76_v10 = vld [vmem:[#allocation2 + $0x38] sm:$0xff] }
  0x38   :  { %540 = vmatprep.subr.bf16.mxu0 %v539_v3  ;;  %v547_v8 = vpack.c.bf16 %v74_v7, %v73_v6  ;;  %v810_v11 = vld [vmem:[%s836_s0] sm:$0xff]  ;;  %v170_v13 = vld [vmem:[#allocation4 + $0x8] sm:$0xff]  ;;  %v171_v14 = vld [vmem:[#allocation4 + $0x10] sm:$0xff]  ;;  %v551_v20 = vpack.c.bf16 %v76_v10, %v75_v9 }
  0x39   :  { %542 = vmatpush3.bf16.msra.mxu0 %v539_v3  ;;  %466 = vmatprep.mubr.f32.mxu0 %v810_v11  ;;  %v169_v12 = vld [vmem:[#allocation4] sm:$0xff]  ;;  %v172_v16 = vld [vmem:[#allocation4 + $0x18] sm:$0xff]  ;;  %v174_v19 = vld [vmem:[#allocation4 + $0x28] sm:$0xff] }
  0x3a   :  { %544 = vmatprep.subr.bf16.mxu0 %v543_v5  ;;  %v571_v15 = vpack.c.bf16 %v170_v13, %v169_v12  ;;  %v575_v17 = vpack.c.bf16 %v172_v16, %v171_v14  ;;  %v173_v18 = vld [vmem:[#allocation4 + $0x20] sm:$0xff]  ;;  %v78_v22 = vld [vmem:[#allocation2 + $0x48] sm:$0xff]  ;;  %v175_v24 = vld [vmem:[#allocation4 + $0x30] sm:$0xff] }
  0x3b   :  { %v77_v21 = vld [vmem:[#allocation2 + $0x40] sm:$0xff]  ;;  %v579_v23 = vpack.c.bf16 %v174_v19, %v173_v18  ;;  %v176_v25 = vld [vmem:[#allocation4 + $0x38] sm:$0xff]  ;;  %v79_v27 = vld [vmem:[#allocation2 + $0x50] sm:$0xff] }
  0x3c   :  { %572 = vmatprep.subr.bf16.mxu1 %v571_v15  ;;  %v555_v26 = vpack.c.bf16 %v78_v22, %v77_v21  ;;  %v80_v28 = vld [vmem:[#allocation2 + $0x58] sm:$0xff]  ;;  %v583_v29 = vpack.c.bf16 %v176_v25, %v175_v24  ;;  %v177_v30 = vld [vmem:[#allocation4 + $0x40] sm:$0xff]  ;;  %v178_v31 = vld [vmem:[#allocation4 + $0x48] sm:$0xff] }
  0x3d   :  { %546 = vmatpush3.bf16.msra.mxu0 %v543_v5  ;;  %574 = vmatpush3.bf16.msra.mxu1 %v571_v15  ;;  %v559_v32 = vpack.c.bf16 %v80_v28, %v79_v27  ;;  %v81_v33 = vld [vmem:[#allocation2 + $0x60] sm:$0xff]  ;;  %v82_v34 = vld [vmem:[#allocation2 + $0x68] sm:$0xff]  ;;  %v587_v35 = vpack.c.bf16 %v178_v31, %v177_v30  ;;  %v179_v36 = vld [vmem:[#allocation4 + $0x50] sm:$0xff] }
  0x3e   :  { %548 = vmatprep.subr.bf16.mxu0 %v547_v8  ;;  %576 = vmatprep.subr.bf16.mxu1 %v575_v17  ;;  %v180_v37 = vld [vmem:[#allocation4 + $0x58] sm:$0xff]  ;;  %v563_v38 = vpack.c.bf16 %v82_v34, %v81_v33  ;;  %v83_v39 = vld [vmem:[#allocation2 + $0x70] sm:$0xff]  ;;  %v181_v42 = vld [vmem:[#allocation4 + $0x60] sm:$0xff] }
  0x3f   :  { %v84_v40 = vld [vmem:[#allocation2 + $0x78] sm:$0xff]  ;;  %v591_v41 = vpack.c.bf16 %v180_v37, %v179_v36  ;;  %v182_v43 = vld [vmem:[#allocation4 + $0x68] sm:$0xff]  ;;  %v183_v47 = vld [vmem:[#allocation4 + $0x70] sm:$0xff] }
  0x40   :  { %v567_v44 = vpack.c.bf16 %v84_v40, %v83_v39  ;;  %v595_v45 = vpack.c.bf16 %v182_v43, %v181_v42  ;;  %v816_v46 = vld [vmem:[%s836_s0 + $0x8] sm:$0xff]  ;;  %v184_v48 = vld [vmem:[#allocation4 + $0x78] sm:$0xff]  ;;  %v269_v50 = vld [vmem:[#allocation6] sm:$0xff] }
  0x41   :  { %550 = vmatpush3.bf16.msra.mxu0 %v547_v8  ;;  %578 = vmatpush3.bf16.msra.mxu1 %v575_v17  ;;  %v599_v49 = vpack.c.bf16 %v184_v48, %v183_v47  ;;  %v270_v51 = vld [vmem:[#allocation6 + $0x8] sm:$0xff]  ;;  %v271_v52 = vld [vmem:[#allocation6 + $0x10] sm:$0xff]  ;;  %v272_v54 = vld [vmem:[#allocation6 + $0x18] sm:$0xff] }
  0x42   :  { %552 = vmatprep.subr.bf16.mxu0 %v551_v20  ;;  %580 = vmatprep.subr.bf16.mxu1 %v579_v23  ;;  %v603_v53 = vpack.c.bf16 %v270_v51, %v269_v50  ;;  %v607_v55 = vpack.c.bf16 %v272_v54, %v271_v52  ;;  %v273_v56 = vld [vmem:[#allocation6 + $0x20] sm:$0xff]  ;;  %v274_v57 = vld [vmem:[#allocation6 + $0x28] sm:$0xff]  ;;  %v275_v59 = vld [vmem:[#allocation6 + $0x30] sm:$0xff] }
  0x43   :  { %v611_v58 = vpack.c.bf16 %v274_v57, %v273_v56  ;;  %v276_v60 = vld [vmem:[#allocation6 + $0x38] sm:$0xff]  ;;  %v277_v62 = vld [vmem:[#allocation6 + $0x40] sm:$0xff]  ;;  %v278_v63 = vld [vmem:[#allocation6 + $0x48] sm:$0xff] }
  0x44   :  { %v615_v61 = vpack.c.bf16 %v276_v60, %v275_v59  ;;  %v619_v0 = vpack.c.bf16 %v278_v63, %v277_v62  ;;  %v279_v1 = vld [vmem:[#allocation6 + $0x50] sm:$0xff]  ;;  %v280_v2 = vld [vmem:[#allocation6 + $0x58] sm:$0xff]  ;;  %v281_v4 = vld [vmem:[#allocation6 + $0x60] sm:$0xff] }
  0x45   :  { %554 = vmatpush3.bf16.msra.mxu0 %v551_v20  ;;  %582 = vmatpush3.bf16.msra.mxu1 %v579_v23  ;;  %v623_v3 = vpack.c.bf16 %v280_v2, %v279_v1  ;;  %v282_v5 = vld [vmem:[#allocation6 + $0x68] sm:$0xff]  ;;  %v377_v7 = vld [vmem:[%s838_s2] ss:$0 sm:$0xff]  ;;  %v283_v15 = vld [vmem:[#allocation6 + $0x70] sm:$0xff] }
  0x46   :  { %556 = vmatprep.subr.bf16.mxu0 %v555_v26  ;;  %584 = vmatprep.subr.bf16.mxu1 %v583_v29  ;;  %v627_v6 = vpack.c.bf16 %v282_v5, %v281_v4  ;;  %v284_v16 = vld [vmem:[#allocation6 + $0x78] sm:$0xff]  ;;  %v378_v18 = vld [vmem:[%s840_s4] ss:$0 sm:$0xff] }
  0x47   :  { %v631_v17 = vpack.c.bf16 %v284_v16, %v283_v15  ;;  %v379_v25 = vld [vmem:[%s842_s6] ss:$0 sm:$0xff] }
  0x49   :  { %558 = vmatpush3.bf16.msra.mxu0 %v555_v26  ;;  %586 = vmatpush3.bf16.msra.mxu1 %v583_v29 }
  0x4a   :  { %560 = vmatprep.subr.bf16.mxu0 %v559_v32  ;;  %588 = vmatprep.subr.bf16.mxu1 %v587_v35 }
  0x4d   :  { %562 = vmatpush3.bf16.msra.mxu0 %v559_v32  ;;  %590 = vmatpush3.bf16.msra.mxu1 %v587_v35 }
  0x4e   :  { %564 = vmatprep.subr.bf16.mxu0 %v563_v38  ;;  %592 = vmatprep.subr.bf16.mxu1 %v591_v41 }
  0x51   :  { %566 = vmatpush3.bf16.msra.mxu0 %v563_v38  ;;  %594 = vmatpush3.bf16.msra.mxu1 %v591_v41 }
  0x52   :  { %568 = vmatprep.subr.bf16.mxu0 %v567_v44  ;;  %596 = vmatprep.subr.bf16.mxu1 %v595_v45 }
  0x55   :  { %570 = vmatpush3.bf16.msra.mxu0 %v567_v44  ;;  %598 = vmatpush3.bf16.msra.mxu1 %v595_v45 }
  0x56   :  { %600 = vmatprep.subr.bf16.mxu1 %v599_v49  ;;  %604 = vmatprep.subr.bf16.mxu0 %v603_v53 }
  0x58   :  { %467 = vmatmul.mubr.f32.vlgmr.msra.gmra.mrb[0].mxu0 %v816_v46 }
  0x59   :  { %602 = vmatpush3.bf16.msra.mxu1 %v599_v49  ;;  %606 = vmatpush3.bf16.msra.mxu0 %v603_v53 }
  0x5a   :  { %608 = vmatprep.subr.bf16.mxu0 %v607_v55 }
  0x5d   :  { %610 = vmatpush3.bf16.msra.mxu0 %v607_v55 }
  0x5e   :  { %612 = vmatprep.subr.bf16.mxu0 %v611_v58 }
  0x61   :  { %614 = vmatpush3.bf16.msra.mxu0 %v611_v58 }
  0x62   :  { %616 = vmatprep.subr.bf16.mxu0 %v615_v61 }
  0x65   :  { %618 = vmatpush3.bf16.msra.mxu0 %v615_v61 }
  0x66   :  { %620 = vmatprep.subr.bf16.mxu0 %v619_v0 }
  0x69   :  { %622 = vmatpush3.bf16.msra.mxu0 %v619_v0 }
  0x6a   :  { %624 = vmatprep.subr.bf16.mxu0 %v623_v3 }
  0x6d   :  { %626 = vmatpush3.bf16.msra.mxu0 %v623_v3 }
  0x6e   :  { %628 = vmatprep.subr.bf16.mxu0 %v627_v6 }
  0x71   :  { %630 = vmatpush3.bf16.msra.mxu0 %v627_v6 }
  0x72   :  { %632 = vmatprep.subr.bf16.mxu0 %v631_v17 }
  0x75   :  { %634 = vmatpush3.bf16.msra.mxu0 %v631_v17 }
 0x12b   :  { %v468_v8 = vpop.f32.mrb[0].mxu0 }
 0x12c   :  { %v164_v9 = vadd.f32 %v468_v8, %v377_v7  ;;  %v158_v10 = vpop.f32.mrb[1].mxu0 }
 0x12d   :  { %v159_v12 = vadd.f32 %v377_v7, %v158_v10 }
 0x12e   :  { %v168_v14 = vmax.f32 %v164_v9, 0.0 }
 0x12f   :  { %v167_v13 = vmax.f32 %v159_v12, 0.0 }
 0x131   :  { %501 = vmatprep.mubr.f32.mxu1 %v167_v13 }
 0x132   :  { %502 = vmatmul.mubr.f32.vlgmr.msra.gmra.mrb[0].mxu1 %v168_v14 }
 0x205   :  { %v503_v19 = vpop.f32.mrb[0].mxu1 }
 0x206   :  { %v264_v20 = vadd.f32 %v503_v19, %v378_v18  ;;  %v258_v21 = vpop.f32.mrb[1].mxu1 }
 0x207   :  { %v259_v22 = vadd.f32 %v378_v18, %v258_v21 }
 0x208   :  { %v268_v24 = vmax.f32 %v264_v20, 0.0 }
 0x209   :  { %v267_v23 = vmax.f32 %v259_v22, 0.0 }
 0x20b   :  { %536 = vmatprep.mubr.f32.mxu0 %v267_v23 }
 0x20c   :  { %537 = vmatmul.mubr.f32.vlgmr.msra.gmra.mrb[2].mxu0 %v268_v24 }
 0x2df   :  { %v538_v26 = vpop.f32.mrb[2].mxu0 }
 0x2e0   :  { %v364_v27 = vadd.f32 %v538_v26, %v379_v25  ;;  %v358_v28 = vpop.f32.mrb[3].mxu0 }
 0x2e1   :  { %v359_v29 = vadd.f32 %v379_v25, %v358_v28 }
 0x2e2   :  { %v368_v30 = vadd.f32 %v364_v27, %v816_v46 }
 0x2e3   :  { %v367_v31 = vadd.f32 %v359_v29, %v810_v11 }
 0x2e4   :  { %370 = vst [vmem:[%s843_s7 + $0x8] sm:$0xff] %v368_v30 }
 0x2e5   :  { %369 = vst [vmem:[%s843_s7] sm:$0xff] %v367_v31 }
 0x2e6   :  { %375 = vsyncpa [#allocation3], 1 }
 0x2e7   :  { %376 = vsyncpa [#allocation5], 1 }

// kernel: _fused_adapter_call.1
= control target key start
LH: loop header
LB: loop body
LE: loop exit
PB: predicated region body
PF: predicated region fallthrough
CT: control target
= control target key end

     0   :  { %12 = vsyncpa [#allocation3], 0  ;;  %s836_s0 = inlined_call_operand.vmem [shape: f32[16,128], index: 0, kind: input, shape index: {}]   ;;  %s837_s1 = inlined_call_operand.hbm [shape: f32[128,128], index: 1, kind: input, shape index: {}]   ;;  %s838_s2 = inlined_call_operand.vmem [shape: f32[1,128], index: 2, kind: input, shape index: {}]   ;;  %s839_s3 = inlined_call_operand.hbm [shape: f32[128,128], index: 3, kind: input, shape index: {}]   ;;  %s840_s4 = inlined_call_operand.vmem [shape: f32[1,128], index: 4, kind: input, shape index: {}]   ;;  %s841_s5 = inlined_call_operand.hbm [shape: f32[128,128], index: 5, kind: input, shape index: {}]   ;;  %s842_s6 = inlined_call_operand.vmem [shape: f32[1,128], index: 6, kind: input, shape index: {}]   ;;  %s843_s7 = inlined_call_operand.vmem [shape: f32[16,128], index: 7, kind: output, shape index: {}]  }
   0x1   :  { %13 = vsyncpa [#allocation5], 0  ;;  %s710_s24 = smov [#allocation4]   ;;  %s711_s26 = smov [#allocation2]  }
   0x2   :  { %s35_s25 = sshll.u32 %s710_s24, 4  ;;  %s21_s27 = sshll.u32 %s711_s26, 4  ;;  %s36_s25 = int_to_ptr.vmem [resolvable:$true] %s35_s25  ;;  %s755_s27 = int_to_ptr.vmem [resolvable:$true] %s21_s27 }
   0x3   :  { %s640_s30 = scalar_lea.hbm %s839_s3, 2048 }
   0x4   :  { %p641_p0 = scmp.ne.s32.totalorder %s839_s3, %s640_s30  ;;  %p644_p1 = scmp.lt.u32.totalorder %s640_s30, %s839_s3 }
   0x6   :  { %p646_p2 = pnand %p644_p1, %p641_p0 }
   0x8   :  { %649 = shalt.err (!%p646_p2)
}
   0x9   :  { %s650_s12 = scalar_lea.vmem %s36_s25, 2048  ;;  %p655_p4 = scmp.lt.s32.totalorder %s36_s25, %s36_s25 }
   0xa   :  { %p651_p3 = scmp.ne.s32.totalorder %s36_s25, %s650_s12  ;;  %p656_p5 = scmp.lt.s32.totalorder %s650_s12, %s650_s12 }
   0xc   :  { %p657_p6 = por %p656_p5, %p655_p4 }
   0xe   :  { %p658_p7 = pnand %p657_p6, %p651_p3 }
  0x10   :  { %661 = shalt.err (!%p658_p7)
}
  0x11   :  { %s712_s13 = smov 128   ;;  %s713_s14 = smov 8  }
  0x12   :  { %41 = dma.hbm_to_vmem [thread:$0]  %s839_s3, 2048, %s36_s25, [#allocation5], %s712_s13, %s712_s13, %s713_s14  }
  0x13   :  { %s662_s19 = scalar_lea.hbm %s837_s1, 2048 }
  0x14   :  { %p663_p8 = scmp.ne.s32.totalorder %s837_s1, %s662_s19  ;;  %p666_p9 = scmp.lt.u32.totalorder %s662_s19, %s837_s1 }
  0x16   :  { %p668_p10 = pnand %p666_p9, %p663_p8 }
  0x18   :  { %671 = shalt.err (!%p668_p10)
}
  0x19   :  { %s672_s24 = scalar_lea.vmem %s755_s27, 2048  ;;  %p677_p12 = scmp.lt.s32.totalorder %s755_s27, %s755_s27 }
  0x1a   :  { %p673_p11 = scmp.ne.s32.totalorder %s755_s27, %s672_s24  ;;  %p678_p13 = scmp.lt.s32.totalorder %s672_s24, %s672_s24 }
  0x1c   :  { %p679_p0 = por %p678_p13, %p677_p12 }
  0x1e   :  { %p680_p1 = pnand %p679_p0, %p673_p11 }
  0x20   :  { %683 = shalt.err (!%p680_p1)
}
  0x21   :  { %27 = dma.hbm_to_vmem [thread:$0]  %s837_s1, 2048, %s755_s27, [#allocation3], %s712_s13, %s712_s13, %s713_s14  }
  0x22   :  { %s714_s26 = smov [#allocation6]   ;;  %s684_s8 = scalar_lea.hbm %s841_s5, 2048 }
  0x23   :  { %s49_s28 = sshll.u32 %s714_s26, 4  ;;  %p685_p2 = scmp.ne.s32.totalorder %s841_s5, %s684_s8  ;;  %s50_s28 = int_to_ptr.vmem [resolvable:$true] %s49_s28 }
  0x24   :  { %p688_p3 = scmp.lt.u32.totalorder %s684_s8, %s841_s5 }
  0x26   :  { %p690_p4 = pnand %p688_p3, %p685_p2 }
  0x28   :  { %693 = shalt.err (!%p690_p4)
}
  0x29   :  { %s694_s15 = scalar_lea.vmem %s50_s28, 2048  ;;  %p699_p6 = scmp.lt.s32.totalorder %s50_s28, %s50_s28 }
  0x2a   :  { %p695_p5 = scmp.ne.s32.totalorder %s50_s28, %s694_s15  ;;  %p700_p7 = scmp.lt.s32.totalorder %s694_s15, %s694_s15 }
  0x2c   :  { %p701_p8 = por %p700_p7, %p699_p6 }
  0x2e   :  { %p702_p9 = pnand %p701_p8, %p695_p5 }
  0x30   :  { %705 = shalt.err (!%p702_p9)
}
  0x31   :  { %55 = dma.hbm_to_vmem [thread:$0]  %s841_s5, 2048, %s50_s28, [#allocation5], %s712_s13, %s712_s13, %s713_s14  }
  0x32   :  { %706 = dma.done.wait [#allocation3], 2048  }
  0x33   :  { %707 = vsyncadd [#allocation3], 4294965248 }
  0x34   :  { %708 = dma.done.wait [#allocation5], 4096  }
  0x35   :  { %709 = vsyncadd [#allocation5], 4294963200  ;;  %v69_v0 = vld [vmem:[#allocation2] sm:$0xff]  ;;  %v70_v1 = vld [vmem:[#allocation2 + $0x8] sm:$0xff] }
  0x36   :  { %v71_v2 = vld [vmem:[#allocation2 + $0x10] sm:$0xff]  ;;  %v539_v3 = vpack.c.bf16 %v70_v1, %v69_v0  ;;  %v72_v4 = vld [vmem:[#allocation2 + $0x18] sm:$0xff]  ;;  %v73_v6 = vld [vmem:[#allocation2 + $0x20] sm:$0xff] }
  0x37   :  { %v543_v5 = vpack.c.bf16 %v72_v4, %v71_v2  ;;  %v74_v7 = vld [vmem:[#allocation2 + $0x28] sm:$0xff]  ;;  %v75_v9 = vld [vmem:[#allocation2 + $0x30] sm:$0xff]  ;;  %v76_v10 = vld [vmem:[#allocation2 + $0x38] sm:$0xff] }
  0x38   :  { %540 = vmatprep.subr.bf16.mxu0 %v539_v3  ;;  %v547_v8 = vpack.c.bf16 %v74_v7, %v73_v6  ;;  %v810_v11 = vld [vmem:[%s836_s0] sm:$0xff]  ;;  %v170_v13 = vld [vmem:[#allocation4 + $0x8] sm:$0xff]  ;;  %v171_v14 = vld [vmem:[#allocation4 + $0x10] sm:$0xff]  ;;  %v551_v20 = vpack.c.bf16 %v76_v10, %v75_v9 }
  0x39   :  { %542 = vmatpush3.bf16.msra.mxu0 %v539_v3  ;;  %466 = vmatprep.mubr.f32.mxu0 %v810_v11  ;;  %v169_v12 = vld [vmem:[#allocation4] sm:$0xff]  ;;  %v172_v16 = vld [vmem:[#allocation4 + $0x18] sm:$0xff]  ;;  %v174_v19 = vld [vmem:[#allocation4 + $0x28] sm:$0xff] }
  0x3a   :  { %544 = vmatprep.subr.bf16.mxu0 %v543_v5  ;;  %v571_v15 = vpack.c.bf16 %v170_v13, %v169_v12  ;;  %v575_v17 = vpack.c.bf16 %v172_v16, %v171_v14  ;;  %v173_v18 = vld [vmem:[#allocation4 + $0x20] sm:$0xff]  ;;  %v78_v22 = vld [vmem:[#allocation2 + $0x48] sm:$0xff]  ;;  %v175_v24 = vld [vmem:[#allocation4 + $0x30] sm:$0xff] }
  0x3b   :  { %v77_v21 = vld [vmem:[#allocation2 + $0x40] sm:$0xff]  ;;  %v579_v23 = vpack.c.bf16 %v174_v19, %v173_v18  ;;  %v176_v25 = vld [vmem:[#allocation4 + $0x38] sm:$0xff]  ;;  %v79_v27 = vld [vmem:[#allocation2 + $0x50] sm:$0xff] }
  0x3c   :  { %572 = vmatprep.subr.bf16.mxu1 %v571_v15  ;;  %v555_v26 = vpack.c.bf16 %v78_v22, %v77_v21  ;;  %v80_v28 = vld [vmem:[#allocation2 + $0x58] sm:$0xff]  ;;  %v583_v29 = vpack.c.bf16 %v176_v25, %v175_v24  ;;  %v177_v30 = vld [vmem:[#allocation4 + $0x40] sm:$0xff]  ;;  %v178_v31 = vld [vmem:[#allocation4 + $0x48] sm:$0xff] }
  0x3d   :  { %546 = vmatpush3.bf16.msra.mxu0 %v543_v5  ;;  %574 = vmatpush3.bf16.msra.mxu1 %v571_v15  ;;  %v559_v32 = vpack.c.bf16 %v80_v28, %v79_v27  ;;  %v81_v33 = vld [vmem:[#allocation2 + $0x60] sm:$0xff]  ;;  %v82_v34 = vld [vmem:[#allocation2 + $0x68] sm:$0xff]  ;;  %v587_v35 = vpack.c.bf16 %v178_v31, %v177_v30  ;;  %v179_v36 = vld [vmem:[#allocation4 + $0x50] sm:$0xff] }
  0x3e   :  { %548 = vmatprep.subr.bf16.mxu0 %v547_v8  ;;  %576 = vmatprep.subr.bf16.mxu1 %v575_v17  ;;  %v180_v37 = vld [vmem:[#allocation4 + $0x58] sm:$0xff]  ;;  %v563_v38 = vpack.c.bf16 %v82_v34, %v81_v33  ;;  %v83_v39 = vld [vmem:[#allocation2 + $0x70] sm:$0xff]  ;;  %v181_v42 = vld [vmem:[#allocation4 + $0x60] sm:$0xff] }
  0x3f   :  { %v84_v40 = vld [vmem:[#allocation2 + $0x78] sm:$0xff]  ;;  %v591_v41 = vpack.c.bf16 %v180_v37, %v179_v36  ;;  %v182_v43 = vld [vmem:[#allocation4 + $0x68] sm:$0xff]  ;;  %v183_v47 = vld [vmem:[#allocation4 + $0x70] sm:$0xff] }
  0x40   :  { %v567_v44 = vpack.c.bf16 %v84_v40, %v83_v39  ;;  %v595_v45 = vpack.c.bf16 %v182_v43, %v181_v42  ;;  %v816_v46 = vld [vmem:[%s836_s0 + $0x8] sm:$0xff]  ;;  %v184_v48 = vld [vmem:[#allocation4 + $0x78] sm:$0xff]  ;;  %v269_v50 = vld [vmem:[#allocation6] sm:$0xff] }
  0x41   :  { %550 = vmatpush3.bf16.msra.mxu0 %v547_v8  ;;  %578 = vmatpush3.bf16.msra.mxu1 %v575_v17  ;;  %v599_v49 = vpack.c.bf16 %v184_v48, %v183_v47  ;;  %v270_v51 = vld [vmem:[#allocation6 + $0x8] sm:$0xff]  ;;  %v271_v52 = vld [vmem:[#allocation6 + $0x10] sm:$0xff]  ;;  %v272_v54 = vld [vmem:[#allocation6 + $0x18] sm:$0xff] }
  0x42   :  { %552 = vmatprep.subr.bf16.mxu0 %v551_v20  ;;  %580 = vmatprep.subr.bf16.mxu1 %v579_v23  ;;  %v603_v53 = vpack.c.bf16 %v270_v51, %v269_v50  ;;  %v607_v55 = vpack.c.bf16 %v272_v54, %v271_v52  ;;  %v273_v56 = vld [vmem:[#allocation6 + $0x20] sm:$0xff]  ;;  %v274_v57 = vld [vmem:[#allocation6 + $0x28] sm:$0xff]  ;;  %v275_v59 = vld [vmem:[#allocation6 + $0x30] sm:$0xff] }
  0x43   :  { %v611_v58 = vpack.c.bf16 %v274_v57, %v273_v56  ;;  %v276_v60 = vld [vmem:[#allocation6 + $0x38] sm:$0xff]  ;;  %v277_v62 = vld [vmem:[#allocation6 + $0x40] sm:$0xff]  ;;  %v278_v63 = vld [vmem:[#allocation6 + $0x48] sm:$0xff] }
  0x44   :  { %v615_v61 = vpack.c.bf16 %v276_v60, %v275_v59  ;;  %v619_v0 = vpack.c.bf16 %v278_v63, %v277_v62  ;;  %v279_v1 = vld [vmem:[#allocation6 + $0x50] sm:$0xff]  ;;  %v280_v2 = vld [vmem:[#allocation6 + $0x58] sm:$0xff]  ;;  %v281_v4 = vld [vmem:[#allocation6 + $0x60] sm:$0xff] }
  0x45   :  { %554 = vmatpush3.bf16.msra.mxu0 %v551_v20  ;;  %582 = vmatpush3.bf16.msra.mxu1 %v579_v23  ;;  %v623_v3 = vpack.c.bf16 %v280_v2, %v279_v1  ;;  %v282_v5 = vld [vmem:[#allocation6 + $0x68] sm:$0xff]  ;;  %v377_v7 = vld [vmem:[%s838_s2] ss:$0 sm:$0xff]  ;;  %v283_v15 = vld [vmem:[#allocation6 + $0x70] sm:$0xff] }
  0x46   :  { %556 = vmatprep.subr.bf16.mxu0 %v555_v26  ;;  %584 = vmatprep.subr.bf16.mxu1 %v583_v29  ;;  %v627_v6 = vpack.c.bf16 %v282_v5, %v281_v4  ;;  %v284_v16 = vld [vmem:[#allocation6 + $0x78] sm:$0xff]  ;;  %v378_v18 = vld [vmem:[%s840_s4] ss:$0 sm:$0xff] }
  0x47   :  { %v631_v17 = vpack.c.bf16 %v284_v16, %v283_v15  ;;  %v379_v25 = vld [vmem:[%s842_s6] ss:$0 sm:$0xff] }
  0x49   :  { %558 = vmatpush3.bf16.msra.mxu0 %v555_v26  ;;  %586 = vmatpush3.bf16.msra.mxu1 %v583_v29 }
  0x4a   :  { %560 = vmatprep.subr.bf16.mxu0 %v559_v32  ;;  %588 = vmatprep.subr.bf16.mxu1 %v587_v35 }
  0x4d   :  { %562 = vmatpush3.bf16.msra.mxu0 %v559_v32  ;;  %590 = vmatpush3.bf16.msra.mxu1 %v587_v35 }
  0x4e   :  { %564 = vmatprep.subr.bf16.mxu0 %v563_v38  ;;  %592 = vmatprep.subr.bf16.mxu1 %v591_v41 }
  0x51   :  { %566 = vmatpush3.bf16.msra.mxu0 %v563_v38  ;;  %594 = vmatpush3.bf16.msra.mxu1 %v591_v41 }
  0x52   :  { %568 = vmatprep.subr.bf16.mxu0 %v567_v44  ;;  %596 = vmatprep.subr.bf16.mxu1 %v595_v45 }
  0x55   :  { %570 = vmatpush3.bf16.msra.mxu0 %v567_v44  ;;  %598 = vmatpush3.bf16.msra.mxu1 %v595_v45 }
  0x56   :  { %600 = vmatprep.subr.bf16.mxu1 %v599_v49  ;;  %604 = vmatprep.subr.bf16.mxu0 %v603_v53 }
  0x58   :  { %467 = vmatmul.mubr.f32.vlgmr.msra.gmra.mrb[0].mxu0 %v816_v46 }
  0x59   :  { %602 = vmatpush3.bf16.msra.mxu1 %v599_v49  ;;  %606 = vmatpush3.bf16.msra.mxu0 %v603_v53 }
  0x5a   :  { %608 = vmatprep.subr.bf16.mxu0 %v607_v55 }
  0x5d   :  { %610 = vmatpush3.bf16.msra.mxu0 %v607_v55 }
  0x5e   :  { %612 = vmatprep.subr.bf16.mxu0 %v611_v58 }
  0x61   :  { %614 = vmatpush3.bf16.msra.mxu0 %v611_v58 }
  0x62   :  { %616 = vmatprep.subr.bf16.mxu0 %v615_v61 }
  0x65   :  { %618 = vmatpush3.bf16.msra.mxu0 %v615_v61 }
  0x66   :  { %620 = vmatprep.subr.bf16.mxu0 %v619_v0 }
  0x69   :  { %622 = vmatpush3.bf16.msra.mxu0 %v619_v0 }
  0x6a   :  { %624 = vmatprep.subr.bf16.mxu0 %v623_v3 }
  0x6d   :  { %626 = vmatpush3.bf16.msra.mxu0 %v623_v3 }
  0x6e   :  { %628 = vmatprep.subr.bf16.mxu0 %v627_v6 }
  0x71   :  { %630 = vmatpush3.bf16.msra.mxu0 %v627_v6 }
  0x72   :  { %632 = vmatprep.subr.bf16.mxu0 %v631_v17 }
  0x75   :  { %634 = vmatpush3.bf16.msra.mxu0 %v631_v17 }
 0x12b   :  { %v468_v8 = vpop.f32.mrb[0].mxu0 }
 0x12c   :  { %v164_v9 = vadd.f32 %v468_v8, %v377_v7  ;;  %v158_v10 = vpop.f32.mrb[1].mxu0 }
 0x12d   :  { %v159_v12 = vadd.f32 %v377_v7, %v158_v10 }
 0x12e   :  { %v168_v14 = vmax.f32 %v164_v9, 0.0 }
 0x12f   :  { %v167_v13 = vmax.f32 %v159_v12, 0.0 }
 0x131   :  { %501 = vmatprep.mubr.f32.mxu1 %v167_v13 }
 0x132   :  { %502 = vmatmul.mubr.f32.vlgmr.msra.gmra.mrb[0].mxu1 %v168_v14 }
 0x205   :  { %v503_v19 = vpop.f32.mrb[0].mxu1 }
 0x206   :  { %v264_v20 = vadd.f32 %v503_v19, %v378_v18  ;;  %v258_v21 = vpop.f32.mrb[1].mxu1 }
 0x207   :  { %v259_v22 = vadd.f32 %v378_v18, %v258_v21 }
 0x208   :  { %v268_v24 = vmax.f32 %v264_v20, 0.0 }
 0x209   :  { %v267_v23 = vmax.f32 %v259_v22, 0.0 }
 0x20b   :  { %536 = vmatprep.mubr.f32.mxu0 %v267_v23 }
 0x20c   :  { %537 = vmatmul.mubr.f32.vlgmr.msra.gmra.mrb[2].mxu0 %v268_v24 }
 0x2df   :  { %v538_v26 = vpop.f32.mrb[2].mxu0 }
 0x2e0   :  { %v364_v27 = vadd.f32 %v538_v26, %v379_v25  ;;  %v358_v28 = vpop.f32.mrb[3].mxu0 }
 0x2e1   :  { %v359_v29 = vadd.f32 %v379_v25, %v358_v28 }
 0x2e2   :  { %v368_v30 = vadd.f32 %v364_v27, %v816_v46 }
 0x2e3   :  { %v367_v31 = vadd.f32 %v359_v29, %v810_v11 }
 0x2e4   :  { %370 = vst [vmem:[%s843_s7 + $0x8] sm:$0xff] %v368_v30 }
 0x2e5   :  { %369 = vst [vmem:[%s843_s7] sm:$0xff] %v367_v31 }
 0x2e6   :  { %375 = vsyncpa [#allocation3], 1 }
 0x2e7   :  { %376 = vsyncpa [#allocation5], 1 }

</bundles_post_ra>
